<compile_context>
chip_gen: v6e
topology: v6e:2x2x1
jax: 0.10.0
libtpu: 0.0.40
codegen_flags: <defaults>
</compile_context>

<pallas_src>
import math
import jax
import jax.numpy as jnp
from jax import lax
from jax.experimental import pallas as pl
from jax.experimental.pallas import tpu as pltpu

HIDDEN = 512  # fixed by the module definition


# ----------------------------- Pallas kernel ------------------------------- #
def _critic_kernel(x_ref, w1_ref, w2_ref, b2_ref, wq_ref, bq_ref, o_ref):
    wdt = w1_ref.dtype  # MXU dots at the weight dtype (bf16), f32 accumulation

    # fc1 (+ b1 folded as the last weight row against the ones lane of x)
    h1 = jnp.dot(x_ref[...].astype(wdt), w1_ref[...],
                 preferred_element_type=jnp.float32)          # [Bt, 512] f32
    h1 = jnp.maximum(h1, 0.0)                                 # ReLU (f32)

    # fc2
    h2 = jnp.dot(h1.astype(wdt), w2_ref[...],
                 preferred_element_type=jnp.float32)          # [Bt, 512] f32
    h2 = jnp.maximum(h2 + b2_ref[...], 0.0)                   # ReLU (f32)

    # q projection on the MXU: wq [1,512] . h2 [Bt,512] contracted on 512
    # -> lane-dense [1, Bt] row (same contraction pattern as q @ k^T).
    q = lax.dot_general(wq_ref[...], h2, (((1,), (1,)), ((), ())),
                        preferred_element_type=jnp.float32)   # [1, Bt] f32
    o_ref[...] = (q + bq_ref[0]).astype(o_ref.dtype)


# --------------------------- block-size selection --------------------------- #
def _num_tensorcores():
    """Best-effort TensorCore-per-chip query (v7x has 2); defaults to 1."""
    try:
        info = pltpu.get_tpu_info()
        for name in ("num_cores", "core_count", "num_tensorcores",
                     "cores_per_chip"):
            v = getattr(info, name, None)
            if isinstance(v, int) and v > 0:
                return v
    except Exception:
        pass
    try:
        v = getattr(jax.devices()[0], "num_cores", None)
        if isinstance(v, int) and v > 0:
            return v
    except Exception:
        pass
    return 1


def _pick_block_b(B, num_cores=1):
    # Largest 128-multiple divisor of B up to 1024 keeps the lane-dense
    # (1, block_b) output block aligned; otherwise take the whole batch
    # (block == full dim is always legal).
    block_b = B
    for cand in (1024, 512, 256, 128):
        if B % cand == 0:
            block_b = cand
            break
    # Multi-TensorCore chips (v7x): make sure the "parallel" batch axis has at
    # least num_cores steps so no core idles, while keeping 128 alignment.
    if num_cores > 1:
        while (block_b > 128 and (B // block_b) < num_cores
               and (block_b // 2) % 128 == 0):
            block_b //= 2
    return block_b


# --------------------------------- wrapper ---------------------------------- #
def critic_forward(s, a, params, *, block_b=None):
    """Critic forward. s: [B, state_dim], a: [B, action_dim] -> q: [B, 1]."""
    w1_aug, w2, b2, wq_row, bq = params
    B, state_dim = s.shape
    _, action_dim = a.shape
    d_in1 = state_dim + action_dim + 1
    assert w1_aug.shape == (d_in1, HIDDEN)

    # x = [s | a | 1]: 33 lanes = one vreg width; folds the concat AND the
    # fc1 bias into a single MXU dot inside the kernel.
    x = jnp.concatenate([s, a, jnp.ones((B, 1), s.dtype)], axis=-1)

    if block_b is None:
        block_b = _pick_block_b(B, _num_tensorcores())
    assert B % block_b == 0, (B, block_b)
    assert block_b % 128 == 0 or block_b == B, (B, block_b)
    grid = (B // block_b,)

    # Constant-index blocks (weights / biases): single-buffered, they never
    # change across grid steps.
    def const(shape):
        return pl.BlockSpec(shape, lambda i: (0, 0),
                            pipeline_mode=pl.Buffered(1))

    q_row = pl.pallas_call(
        _critic_kernel,
        out_shape=jax.ShapeDtypeStruct((1, B), jnp.float32),
        grid_spec=pltpu.PrefetchScalarGridSpec(
            num_scalar_prefetch=0,
            grid=grid,
            in_specs=[
                pl.BlockSpec((block_b, d_in1), lambda i: (i, 0)),   # x = [s|a|1]
                const((d_in1, HIDDEN)),                              # W1 (+b1 row)
                const((HIDDEN, HIDDEN)),                             # W2
                const((1, HIDDEN)),                                  # b2
                const((1, HIDDEN)),                                  # Wq row
                pl.BlockSpec(memory_space=pltpu.MemorySpace.SMEM),   # bq scalar
            ],
            out_specs=pl.BlockSpec((1, block_b), lambda i: (0, i)),  # lane-dense
        ),
        compiler_params=pltpu.CompilerParams(
            dimension_semantics=("parallel",),
        ),
    )(x, w1_aug, w2, b2, wq_row, bq)

    return q_row.reshape(B, 1)


# ------------------------- deterministic parameters ------------------------- #
def _xavier_uniform(key, fan_in, fan_out, shape):
    # Matches torch.nn.init.xavier_uniform_: bound = sqrt(6 / (fan_in+fan_out)).
    bound = math.sqrt(6.0 / (fan_in + fan_out))
    return jax.random.uniform(key, shape, jnp.float32, -bound, bound)


def init_critic_params(key, state_dim, action_dim, weight_dtype=jnp.bfloat16):
    """Returns (W1_aug, W2, b2, Wq_row, bq).

    W1_aug is [state_dim+action_dim+1, 512]: the PyTorch fc1 weight
    (pre-transposed to (in, out)) with b1 appended as the final row, so the
    kernel's ones lane picks it up on the MXU. W1/W2 stored in `weight_dtype`
    (bf16 by default); b2 / Wq / bq stay f32.
    """
    d_in = state_dim + action_dim
    k1, k2, k3 = jax.random.split(key, 3)
    w1 = _xavier_uniform(k1, d_in, HIDDEN, (d_in, HIDDEN))
    b1 = jnp.zeros((1, HIDDEN), jnp.float32)
    w1_aug = jnp.concatenate([w1, b1], axis=0).astype(weight_dtype)
    w2 = _xavier_uniform(k2, HIDDEN, HIDDEN, (HIDDEN, HIDDEN)).astype(weight_dtype)
    b2 = jnp.zeros((1, HIDDEN), jnp.float32)
    wq_row = _xavier_uniform(k3, HIDDEN, 1, (1, HIDDEN))  # lane-dense, f32
    bq = jnp.zeros((1,), jnp.float32)
    return (w1_aug, w2, b2, wq_row, bq)


# ------------------------------- pure-JAX ref ------------------------------- #
def critic_ref(s, a, params):
    w1_aug, w2, b2, wq_row, bq = params
    wdt = w1_aug.dtype
    x = jnp.concatenate([s, a, jnp.ones((s.shape[0], 1), s.dtype)], axis=-1)
    h1 = jnp.maximum(
        jnp.dot(x.astype(wdt), w1_aug, preferred_element_type=jnp.float32), 0.0)
    h2 = jnp.maximum(
        jnp.dot(h1.astype(wdt), w2, preferred_element_type=jnp.float32) + b2, 0.0)
    return jnp.dot(h2, wq_row.T) + bq  # [B, 1]


if __name__ == "__main__":
    state_dim, action_dim, batch = 24, 8, 8

    key = jax.random.PRNGKey(0)
    k_s, k_a, k_p = jax.random.split(key, 3)
    s = jax.random.normal(k_s, (batch, state_dim), jnp.float32)
    a = jax.random.normal(k_a, (batch, action_dim), jnp.float32)
    params = init_critic_params(k_p, state_dim, action_dim)

    q = critic_forward(s, a, params)
    q = jax.block_until_ready(q)

    q_ref = critic_ref(s, a, params)
    assert q.shape == (batch, 1), q.shape
    assert jnp.allclose(q, q_ref, atol=2e-3, rtol=2e-3), (
        f"max abs err = {jnp.max(jnp.abs(q - q_ref))}"
    )
    print("KERNEL_OK")
</pallas_src>

<mosaic_0001>
module attributes {stable_mosaic.version = 11 : i64} {
  func.func @_critic_kernel(%arg0: i32, %arg1: memref<8x33xf32, #tpu.memory_space<vmem>>, %arg2: memref<33x512xbf16, #tpu.memory_space<vmem>>, %arg3: memref<512x512xbf16, #tpu.memory_space<vmem>>, %arg4: memref<1x512xf32, #tpu.memory_space<vmem>>, %arg5: memref<1x512xf32, #tpu.memory_space<vmem>>, %arg6: memref<1xf32, #tpu.memory_space<smem>>, %arg7: memref<1x8xf32, #tpu.memory_space<vmem>>) attributes {dimension_semantics = [#tpu.dimension_semantics<parallel>], iteration_bounds = array<i64: 1>, scalar_prefetch = 0 : i64, scratch_operands = 0 : i64, tpu.core_type = #tpu.core_type<tc>, window_params = [{transform_indices = @transform_0, window_bounds = array<i64: 8, 33>}, {pipeline_mode = #tpu.pipeline_mode<synchronous>, transform_indices = @transform_1, window_bounds = array<i64: 33, 512>}, {pipeline_mode = #tpu.pipeline_mode<synchronous>, transform_indices = @transform_2, window_bounds = array<i64: 512, 512>}, {pipeline_mode = #tpu.pipeline_mode<synchronous>, transform_indices = @transform_3, window_bounds = array<i64: 1, 512>}, {pipeline_mode = #tpu.pipeline_mode<synchronous>, transform_indices = @transform_4, window_bounds = array<i64: 1, 512>}, {transform_indices = @transform_5, window_bounds = array<i64: 1>}, {transform_indices = @transform_6, window_bounds = array<i64: 1, 8>}]} {
    %c0 = arith.constant 0 : index
    %c0_0 = arith.constant 0 : index
    %0 = vector.load %arg1[%c0, %c0_0] : memref<8x33xf32, #tpu.memory_space<vmem>>, vector<8x33xf32>
    %1 = arith.truncf %0 : vector<8x33xf32> to vector<8x33xbf16>
    %c0_1 = arith.constant 0 : index
    %c0_2 = arith.constant 0 : index
    %2 = vector.load %arg2[%c0_1, %c0_2] : memref<33x512xbf16, #tpu.memory_space<vmem>>, vector<33x512xbf16>
    %cst = arith.constant dense<0.000000e+00> : vector<8x512xf32>
    %3 = tpu.matmul %1, %2, %cst {dimension_numbers = #tpu.dot_dimension_numbers<[1], [0], [0], [1], [0, 0, 1, 1], [], []>} : vector<8x33xbf16>, vector<33x512xbf16>, vector<8x512xf32> -> vector<8x512xf32>
    %cst_3 = arith.constant 0.000000e+00 : f32
    %4 = vector.broadcast %cst_3 : f32 to vector<8x512xf32>
    %5 = arith.maximumf %3, %4 : vector<8x512xf32>
    %6 = arith.truncf %5 : vector<8x512xf32> to vector<8x512xbf16>
    %c0_4 = arith.constant 0 : index
    %c0_5 = arith.constant 0 : index
    %7 = vector.load %arg3[%c0_4, %c0_5] : memref<512x512xbf16, #tpu.memory_space<vmem>>, vector<512x512xbf16>
    %cst_6 = arith.constant dense<0.000000e+00> : vector<8x512xf32>
    %8 = tpu.matmul %6, %7, %cst_6 {dimension_numbers = #tpu.dot_dimension_numbers<[1], [0], [0], [1], [0, 0, 1, 1], [], []>} : vector<8x512xbf16>, vector<512x512xbf16>, vector<8x512xf32> -> vector<8x512xf32>
    %c0_7 = arith.constant 0 : index
    %c0_8 = arith.constant 0 : index
    %9 = vector.load %arg4[%c0_7, %c0_8] : memref<1x512xf32, #tpu.memory_space<vmem>>, vector<1x512xf32>
    %10 = vector.broadcast %9 : vector<1x512xf32> to vector<8x512xf32>
    %11 = arith.addf %8, %10 : vector<8x512xf32>
    %cst_9 = arith.constant 0.000000e+00 : f32
    %12 = vector.broadcast %cst_9 : f32 to vector<8x512xf32>
    %13 = arith.maximumf %11, %12 : vector<8x512xf32>
    %c0_10 = arith.constant 0 : index
    %c0_11 = arith.constant 0 : index
    %14 = vector.load %arg5[%c0_10, %c0_11] : memref<1x512xf32, #tpu.memory_space<vmem>>, vector<1x512xf32>
    %cst_12 = arith.constant dense<0.000000e+00> : vector<1x8xf32>
    %15 = tpu.matmul %14, %13, %cst_12 {dimension_numbers = #tpu.dot_dimension_numbers<[1], [1], [0], [0], [0, 0, 1, 0], [], []>} : vector<1x512xf32>, vector<8x512xf32>, vector<1x8xf32> -> vector<1x8xf32>
    %c0_13 = arith.constant 0 : index
    %16 = memref.load %arg6[%c0_13] : memref<1xf32, #tpu.memory_space<smem>>
    %17 = vector.broadcast %16 : f32 to vector<1x8xf32>
    %18 = arith.addf %15, %17 : vector<1x8xf32>
    %c0_14 = arith.constant 0 : index
    %c0_15 = arith.constant 0 : index
    %19 = vector.load %arg7[%c0_14, %c0_15] : memref<1x8xf32, #tpu.memory_space<vmem>>, vector<1x8xf32>
    tpu.vector_store %arg7[%c0_14, %c0_15], %18 {strides = array<i32>} : memref<1x8xf32, #tpu.memory_space<vmem>>, vector<1x8xf32>,
    return
  }
  func.func @transform_0(%arg0: i32) -> (i32, i32) {
    %c0_i32 = arith.constant 0 : i32
    %c0_i32_0 = arith.constant 0 : i32
    return %arg0, %c0_i32 : i32, i32
  }
  func.func @transform_1(%arg0: i32) -> (i32, i32) {
    %c0_i32 = arith.constant 0 : i32
    %c0_i32_0 = arith.constant 0 : i32
    %c0_i32_1 = arith.constant 0 : i32
    return %c0_i32, %c0_i32_0 : i32, i32
  }
  func.func @transform_2(%arg0: i32) -> (i32, i32) {
    %c0_i32 = arith.constant 0 : i32
    %c0_i32_0 = arith.constant 0 : i32
    %c0_i32_1 = arith.constant 0 : i32
    return %c0_i32, %c0_i32_0 : i32, i32
  }
  func.func @transform_3(%arg0: i32) -> (i32, i32) {
    %c0_i32 = arith.constant 0 : i32
    %c0_i32_0 = arith.constant 0 : i32
    %c0_i32_1 = arith.constant 0 : i32
    return %c0_i32, %c0_i32_0 : i32, i32
  }
  func.func @transform_4(%arg0: i32) -> (i32, i32) {
    %c0_i32 = arith.constant 0 : i32
    %c0_i32_0 = arith.constant 0 : i32
    %c0_i32_1 = arith.constant 0 : i32
    return %c0_i32, %c0_i32_0 : i32, i32
  }
  func.func @transform_5(%arg0: i32) -> i32 {
    %c0_i32 = arith.constant 0 : i32
    %c0_i32_0 = arith.constant 0 : i32
    return %c0_i32 : i32
  }
  func.func @transform_6(%arg0: i32) -> (i32, i32) {
    %c0_i32 = arith.constant 0 : i32
    %c0_i32_0 = arith.constant 0 : i32
    return %c0_i32, %arg0 : i32, i32
  }
}

</mosaic_0001>

<bundles_post_ra>
// kernel: tpu_custom_call.1
= control target key start
LH: loop header
LB: loop body
LE: loop exit
PB: predicated region body
PF: predicated region fallthrough
CT: control target
= control target key end

     0   :  { %12 = vsyncpa [#allocation4], 0  ;;  %s1890_s0 = inlined_call_operand.hbm [shape: f32[8,33], index: 0, kind: input, shape index: {}]   ;;  %s1891_s1 = inlined_call_operand.hbm [shape: bf16[33,512], index: 1, kind: input, shape index: {}]   ;;  %s1892_s2 = inlined_call_operand.hbm [shape: bf16[512,512], index: 2, kind: input, shape index: {}]   ;;  %s1893_s3 = inlined_call_operand.vmem [shape: f32[1,512], index: 3, kind: input, shape index: {}]   ;;  %s1894_s4 = inlined_call_operand.vmem [shape: f32[1,512], index: 4, kind: input, shape index: {}]   ;;  %s1895_s5 = inlined_call_operand.<no memory space> [shape: f32[1], index: 5, kind: input, shape index: {}]   ;;  %s1896_s6 = inlined_call_operand.hbm [shape: f32[1,8], index: 6, kind: output, shape index: {}]  }
   0x1   :  { %13 = vsyncpa [#allocation7], 0 }
   0x2   :  { %14 = vsyncpa [#allocation5], 0  ;;  %s1819_s21 = smov [#allocation6]  }
   0x3   :  { %s30_s22 = sshll.u32 %s1819_s21, 4  ;;  %s31_s22 = int_to_ptr.vmem [resolvable:$true] %s30_s22 }
   0x4   :  { %s1741_s23 = scalar_lea.vmem %s31_s22, 1280  ;;  %p1746_p1 = scmp.lt.s32.totalorder %s31_s22, %s31_s22 }
   0x5   :  { %p1742_p0 = scmp.ne.s32.totalorder %s31_s22, %s1741_s23  ;;  %p1747_p2 = scmp.lt.s32.totalorder %s1741_s23, %s1741_s23 }
   0x7   :  { %p1748_p3 = por %p1747_p2, %p1746_p1 }
   0x9   :  { %p1749_p4 = pnand %p1748_p3, %p1742_p0 }
   0xb   :  { %1752 = shalt.err (!%p1749_p4)
}
   0xc   :  { %s1820_s24 = smov 256   ;;  %s1821_s25 = smov 16  }
   0xd   :  { %36 = dma.hbm_to_vmem [thread:$0]  %s1891_s1, 1280, %s31_s22, [#allocation7], %s1820_s24, %s1820_s24, %s1821_s25  }
   0xe   :  { %s1822_s28 = smov [#allocation3]   ;;  %s1823_s30 = smov [#allocation8]  }
   0xf   :  { %s21_s29 = sshll.u32 %s1822_s28, 4  ;;  %s42_s7 = sshll.u32 %s1823_s30, 4  ;;  %s22_s29 = int_to_ptr.vmem [resolvable:$true] %s21_s29  ;;  %s43_s7 = int_to_ptr.vmem [resolvable:$true] %s42_s7 }
  0x10   :  { %s1761_s8 = scalar_lea.vmem %s22_s29, 128  ;;  %p1766_p6 = scmp.lt.s32.totalorder %s22_s29, %s22_s29 }
  0x11   :  { %p1762_p5 = scmp.ne.s32.totalorder %s22_s29, %s1761_s8  ;;  %p1767_p7 = scmp.lt.s32.totalorder %s1761_s8, %s1761_s8 }
  0x13   :  { %p1768_p8 = por %p1767_p7, %p1766_p6 }
  0x15   :  { %p1769_p9 = pnand %p1768_p8, %p1762_p5 }
  0x17   :  { %1772 = shalt.err (!%p1769_p9)
}
  0x18   :  { %24 = dma.hbm_to_vmem [thread:$0]  %s1890_s0, 128, %s22_s29, [#allocation4]  }
  0x19   :  { %s1781_s11 = scalar_lea.vmem %s43_s7, 16384  ;;  %p1786_p11 = scmp.lt.s32.totalorder %s43_s7, %s43_s7 }
  0x1a   :  { %p1782_p10 = scmp.ne.s32.totalorder %s43_s7, %s1781_s11  ;;  %p1787_p12 = scmp.lt.s32.totalorder %s1781_s11, %s1781_s11 }
  0x1c   :  { %p1788_p13 = por %p1787_p12, %p1786_p11 }
  0x1e   :  { %p1789_p0 = pnand %p1788_p13, %p1782_p10 }
  0x20   :  { %1792 = shalt.err (!%p1789_p0)
}
  0x21   :  { %48 = dma.hbm_to_vmem [thread:$0]  %s1892_s2, 16384, %s43_s7, [#allocation7], %s1820_s24, %s1820_s24, %s1821_s25  }
  0x22   :  { %1813 = dma.done.wait [#allocation4], 128  }
  0x23   :  { %1814 = vsyncadd [#allocation4], 4294967168 }
  0x24   :  { %1815 = dma.done.wait [#allocation7], 17664  }
  0x25   :  { %1816 = vsyncadd [#allocation7], 4294949632  ;;  %v1824_v0 = vmov 0   ;;  %vm131_vm0 = vcmask 1040384   ;;  %v75_v1 = vld [vmem:[#allocation6 + $0x40] sm:$0x11] }
  0x26   :  { %178 = vmatprep.mubr.bf16.mxu0 %v1824_v0  ;;  %219 = vmatprep.mubr.bf16.mxu1 %v1824_v0  ;;  %v133_v2 = vsel %vm131_vm0, 65535, %v1824_v0  ;;  %v76_v3 = vld [vmem:[#allocation6 + $0x48] sm:$0x11]  ;;  %v1385_v4 = vcombine.high %v75_v1, %v75_v1  ;;  %v1384_v6 = vcombine.low %v75_v1, %v75_v1  ;;  %v1529_v8 = vld [vmem:[#allocation6 + $0x24] ss:$16 sps:$4 sm:$0xff]   ;;  %v65_v20 = vld [vmem:[#allocation3] sm:$0xff] }
  0x27   :  { %v1387_v5 = vcombine.high %v76_v3, %v76_v3  ;;  %v1386_v7 = vcombine.low %v76_v3, %v76_v3  ;;  %v1531_v13 = vld [vmem:[#allocation6 + $0x2c] ss:$16 sps:$4 sm:$0xff]   ;;  %v1533_v14 = vld [vmem:[#allocation6 + $0x20] ss:$16 sps:$4 sm:$0xff]   ;;  %v1534_v15 = vld [vmem:[#allocation6 + $0x28] ss:$16 sps:$4 sm:$0xff]   ;;  %v66_v23 = vpack.c.bf16 %v65_v20, %v65_v20 }
  0x28   :  { %v138_v9 = vand.u32 %v1385_v4, %v133_v2  ;;  %v135_v11 = vand.u32 %v1384_v6, %v133_v2  ;;  %v1535_v16 = vld [vmem:[#allocation6 + $0x4] ss:$16 sps:$4 sm:$0xff]   ;;  %v1537_v17 = vld [vmem:[#allocation6 + $0xc] ss:$16 sps:$4 sm:$0xff]   ;;  %v1539_v18 = vld [vmem:[#allocation6] ss:$16 sps:$4 sm:$0xff]  }
  0x29   :  { %v144_v10 = vand.u32 %v1387_v5, %v133_v2  ;;  %v141_v12 = vand.u32 %v1386_v7, %v133_v2  ;;  %v1540_v19 = vld [vmem:[#allocation6 + $0x8] ss:$16 sps:$4 sm:$0xff]   ;;  %v1543_v21 = vld [vmem:[#allocation8 + $0xe4] ss:$16 sps:$4 sm:$0xff]   ;;  %v1541_v24 = vld [vmem:[#allocation8 + $0xe0] ss:$16 sps:$4 sm:$0xff]  }
  0x2a   :  { %156 = vmatprep.subr.bf16.mxu0 %v138_v9  ;;  %v1546_v22 = vld [vmem:[#allocation8 + $0x2e4] ss:$16 sps:$4 sm:$0xff]   ;;  %vm127_vm1 = vcmask 269312   ;;  %v1544_v25 = vld [vmem:[#allocation8 + $0x2e0] ss:$16 sps:$4 sm:$0xff]   ;;  %s1825_s15 = smov [#allocation9]  }
  0x2b   :  { %197 = vmatprep.subr.bf16.mxu1 %v144_v10  ;;  %157 = vmatpush1.bf16.msra.mxu0 %v135_v11  ;;  %v1549_v26 = vld [vmem:[#allocation8 + $0xc4] ss:$16 sps:$4 sm:$0xff]   ;;  %v1547_v28 = vld [vmem:[#allocation8 + $0xc0] ss:$16 sps:$4 sm:$0xff]   ;;  %s1366_s16 = sshll.u32 %s1825_s15, 4  ;;  %vm1358_vm2 = vcmask 57344   ;;  %s1367_s16 = int_to_ptr.vmem [resolvable:$true] %s1366_s16 }
  0x2c   :  { %198 = vmatpush1.bf16.msra.mxu1 %v141_v12  ;;  %158 = vmatprep.subr.bf16.mxu0 %v1529_v8  ;;  %v1552_v27 = vld [vmem:[#allocation8 + $0x2c4] ss:$16 sps:$4 sm:$0xff]   ;;  %v1550_v29 = vld [vmem:[#allocation8 + $0x2c0] ss:$16 sps:$4 sm:$0xff]   ;;  %s1793_s17 = scalar_lea.vmem %s1367_s16, 16  ;;  %s1797_s18 = scalar_lea.vmem %s1367_s16, 32 }
  0x2d   :  { %199 = vmatprep.subr.bf16.mxu1 %v1531_v13  ;;  %v1555_v30 = vld [vmem:[#allocation8 + $0xa4] ss:$16 sps:$4 sm:$0xff]   ;;  %v1553_v32 = vld [vmem:[#allocation8 + $0xa0] ss:$16 sps:$4 sm:$0xff]   ;;  %p1794_p1 = scmp.ne.s32.totalorder %s1367_s16, %s1793_s17  ;;  %p1798_p2 = scmp.lt.s32.totalorder %s1367_s16, %s1367_s16 }
  0x2e   :  { %v1558_v31 = vld [vmem:[#allocation8 + $0x2a4] ss:$16 sps:$4 sm:$0xff]   ;;  %v1556_v33 = vld [vmem:[#allocation8 + $0x2a0] ss:$16 sps:$4 sm:$0xff]   ;;  %p1799_p3 = scmp.lt.s32.totalorder %s1797_s18, %s1793_s17 }
  0x2f   :  { %159 = vmatpush1.bf16.msra.mxu0 %v1533_v14  ;;  %v1561_v34 = vld [vmem:[#allocation8 + $0x84] ss:$16 sps:$4 sm:$0xff]   ;;  %v1559_v36 = vld [vmem:[#allocation8 + $0x80] ss:$16 sps:$4 sm:$0xff]  }
  0x30   :  { %200 = vmatpush1.bf16.msra.mxu1 %v1534_v15  ;;  %160 = vmatprep.subr.bf16.mxu0 %v1535_v16  ;;  %v1564_v35 = vld [vmem:[#allocation8 + $0x284] ss:$16 sps:$4 sm:$0xff]   ;;  %v1562_v37 = vld [vmem:[#allocation8 + $0x280] ss:$16 sps:$4 sm:$0xff]   ;;  %p1800_p4 = por %p1799_p3, %p1798_p2 }
  0x31   :  { %201 = vmatprep.subr.bf16.mxu1 %v1537_v17  ;;  %v1567_v38 = vld [vmem:[#allocation8 + $0x64] ss:$16 sps:$4 sm:$0xff]   ;;  %v1565_v40 = vld [vmem:[#allocation8 + $0x60] ss:$16 sps:$4 sm:$0xff]  }
  0x32   :  { %v1570_v39 = vld [vmem:[#allocation8 + $0x264] ss:$16 sps:$4 sm:$0xff]   ;;  %v1568_v41 = vld [vmem:[#allocation8 + $0x260] ss:$16 sps:$4 sm:$0xff]   ;;  %p1801_p5 = pnand %p1800_p4, %p1794_p1 }
  0x33   :  { %161 = vmatpush1.bf16.msra.mxu0 %v1539_v18  ;;  %v1573_v42 = vld [vmem:[#allocation8 + $0x44] ss:$16 sps:$4 sm:$0xff]   ;;  %v1571_v44 = vld [vmem:[#allocation8 + $0x40] ss:$16 sps:$4 sm:$0xff]  }
  0x34   :  { %202 = vmatpush1.bf16.msra.mxu1 %v1540_v19  ;;  %1026 = vmatprep.subr.bf16.mxu0 %v1543_v21  ;;  %v1576_v43 = vld [vmem:[#allocation8 + $0x244] ss:$16 sps:$4 sm:$0xff]   ;;  %v1574_v45 = vld [vmem:[#allocation8 + $0x240] ss:$16 sps:$4 sm:$0xff]  }
  0x35   :  { %1067 = vmatprep.subr.bf16.mxu1 %v1546_v22  ;;  %v1579_v46 = vld [vmem:[#allocation8 + $0x24] ss:$16 sps:$4 sm:$0xff]   ;;  %v1577_v48 = vld [vmem:[#allocation8 + $0x20] ss:$16 sps:$4 sm:$0xff]   ;;  %v1639_v22 = vld [vmem:[#allocation8 + $0xec] ss:$16 sps:$4 sm:$0xff]  }
  0x36   :  { %1388 = vmatmul.mubr.msk.bf16.vlgmr.msra.gmra.mxu0 %vm127_vm1, %v66_v23  ;;  %v1582_v47 = vld [vmem:[#allocation8 + $0x224] ss:$16 sps:$4 sm:$0xff]   ;;  %v1580_v49 = vld [vmem:[#allocation8 + $0x220] ss:$16 sps:$4 sm:$0xff]  }
  0x37   :  { %1389 = vmatmul.mubr.msk.bf16.vlgmr.msra.gmra.mxu1 %vm127_vm1, %v66_v23  ;;  %1027 = vmatpush1.bf16.msra.mxu0 %v1541_v24  ;;  %v1585_v50 = vld [vmem:[#allocation8 + $0x4] ss:$16 sps:$4 sm:$0xff]   ;;  %v1583_v52 = vld [vmem:[#allocation8] ss:$16 sps:$4 sm:$0xff]   ;;  %v1642_v23 = vld [vmem:[#allocation8 + $0x2ec] ss:$16 sps:$4 sm:$0xff]  }
  0x38   :  { %1068 = vmatpush1.bf16.msra.mxu1 %v1544_v25  ;;  %1028 = vmatprep.subr.bf16.mxu0 %v1549_v26  ;;  %v1588_v51 = vld [vmem:[#allocation8 + $0x204] ss:$16 sps:$4 sm:$0xff]   ;;  %v1586_v53 = vld [vmem:[#allocation8 + $0x200] ss:$16 sps:$4 sm:$0xff]  }
  0x39   :  { %1069 = vmatprep.subr.bf16.mxu1 %v1552_v27  ;;  %v1591_v54 = vld [vmem:[#allocation8 + $0x1e4] ss:$16 sps:$4 sm:$0xff]   ;;  %v1589_v56 = vld [vmem:[#allocation8 + $0x1e0] ss:$16 sps:$4 sm:$0xff]  }
  0x3a   :  { %v1594_v55 = vld [vmem:[#allocation8 + $0x3e4] ss:$16 sps:$4 sm:$0xff]   ;;  %v1592_v57 = vld [vmem:[#allocation8 + $0x3e0] ss:$16 sps:$4 sm:$0xff]  }
  0x3b   :  { %1029 = vmatpush1.bf16.msra.mxu0 %v1547_v28  ;;  %v1597_v58 = vld [vmem:[#allocation8 + $0x1c4] ss:$16 sps:$4 sm:$0xff]   ;;  %v1595_v60 = vld [vmem:[#allocation8 + $0x1c0] ss:$16 sps:$4 sm:$0xff]  }
  0x3c   :  { %1070 = vmatpush1.bf16.msra.mxu1 %v1550_v29  ;;  %1030 = vmatprep.subr.bf16.mxu0 %v1555_v30  ;;  %v1600_v59 = vld [vmem:[#allocation8 + $0x3c4] ss:$16 sps:$4 sm:$0xff]   ;;  %v1598_v61 = vld [vmem:[#allocation8 + $0x3c0] ss:$16 sps:$4 sm:$0xff]  }
  0x3d   :  { %1071 = vmatprep.subr.bf16.mxu1 %v1558_v31  ;;  %v1603_v62 = vld [vmem:[#allocation8 + $0x1a4] ss:$16 sps:$4 sm:$0xff]   ;;  %v1601_v0 = vld [vmem:[#allocation8 + $0x1a0] ss:$16 sps:$4 sm:$0xff]  }
  0x3e   :  { %v1606_v63 = vld [vmem:[#allocation8 + $0x3a4] ss:$16 sps:$4 sm:$0xff]   ;;  %v1604_v1 = vld [vmem:[#allocation8 + $0x3a0] ss:$16 sps:$4 sm:$0xff]  }
  0x3f   :  { %1031 = vmatpush1.bf16.msra.mxu0 %v1553_v32  ;;  %v1609_v2 = vld [vmem:[#allocation8 + $0x184] ss:$16 sps:$4 sm:$0xff]   ;;  %v1607_v4 = vld [vmem:[#allocation8 + $0x180] ss:$16 sps:$4 sm:$0xff]  }
  0x40   :  { %1072 = vmatpush1.bf16.msra.mxu1 %v1556_v33  ;;  %1032 = vmatprep.subr.bf16.mxu0 %v1561_v34  ;;  %v1612_v3 = vld [vmem:[#allocation8 + $0x384] ss:$16 sps:$4 sm:$0xff]   ;;  %v1610_v5 = vld [vmem:[#allocation8 + $0x380] ss:$16 sps:$4 sm:$0xff]  }
  0x41   :  { %1073 = vmatprep.subr.bf16.mxu1 %v1564_v35  ;;  %v1615_v6 = vld [vmem:[#allocation8 + $0x164] ss:$16 sps:$4 sm:$0xff]   ;;  %v1613_v8 = vld [vmem:[#allocation8 + $0x160] ss:$16 sps:$4 sm:$0xff]  }
  0x42   :  { %v1618_v7 = vld [vmem:[#allocation8 + $0x364] ss:$16 sps:$4 sm:$0xff]   ;;  %v1616_v9 = vld [vmem:[#allocation8 + $0x360] ss:$16 sps:$4 sm:$0xff]  }
  0x43   :  { %1033 = vmatpush1.bf16.msra.mxu0 %v1559_v36  ;;  %v1621_v10 = vld [vmem:[#allocation8 + $0x144] ss:$16 sps:$4 sm:$0xff]   ;;  %v1619_v12 = vld [vmem:[#allocation8 + $0x140] ss:$16 sps:$4 sm:$0xff]  }
  0x44   :  { %1074 = vmatpush1.bf16.msra.mxu1 %v1562_v37  ;;  %1034 = vmatprep.subr.bf16.mxu0 %v1567_v38  ;;  %v1624_v11 = vld [vmem:[#allocation8 + $0x344] ss:$16 sps:$4 sm:$0xff]   ;;  %v1622_v13 = vld [vmem:[#allocation8 + $0x340] ss:$16 sps:$4 sm:$0xff]   ;;  %v1637_v37 = vld [vmem:[#allocation8 + $0xe8] ss:$16 sps:$4 sm:$0xff]  }
  0x45   :  { %1075 = vmatprep.subr.bf16.mxu1 %v1570_v39  ;;  %v1627_v14 = vld [vmem:[#allocation8 + $0x124] ss:$16 sps:$4 sm:$0xff]   ;;  %v1625_v16 = vld [vmem:[#allocation8 + $0x120] ss:$16 sps:$4 sm:$0xff]   ;;  %v1640_v38 = vld [vmem:[#allocation8 + $0x2e8] ss:$16 sps:$4 sm:$0xff]  }
  0x46   :  { %v1630_v15 = vld [vmem:[#allocation8 + $0x324] ss:$16 sps:$4 sm:$0xff]   ;;  %v1628_v17 = vld [vmem:[#allocation8 + $0x320] ss:$16 sps:$4 sm:$0xff]  }
  0x47   :  { %1035 = vmatpush1.bf16.msra.mxu0 %v1565_v40  ;;  %v1633_v18 = vld [vmem:[#allocation8 + $0x104] ss:$16 sps:$4 sm:$0xff]   ;;  %v1631_v20 = vld [vmem:[#allocation8 + $0x100] ss:$16 sps:$4 sm:$0xff]  }
  0x48   :  { %1076 = vmatpush1.bf16.msra.mxu1 %v1568_v41  ;;  %1036 = vmatprep.subr.bf16.mxu0 %v1573_v42  ;;  %v1636_v19 = vld [vmem:[#allocation8 + $0x304] ss:$16 sps:$4 sm:$0xff]   ;;  %v1634_v21 = vld [vmem:[#allocation8 + $0x300] ss:$16 sps:$4 sm:$0xff]   ;;  %v1645_v42 = vld [vmem:[#allocation8 + $0xcc] ss:$16 sps:$4 sm:$0xff]  }
  0x49   :  { %1077 = vmatprep.subr.bf16.mxu1 %v1576_v43  ;;  %v1648_v43 = vld [vmem:[#allocation8 + $0x2cc] ss:$16 sps:$4 sm:$0xff]  }
  0x4b   :  { %1037 = vmatpush1.bf16.msra.mxu0 %v1571_v44  ;;  %v1643_v44 = vld [vmem:[#allocation8 + $0xc8] ss:$16 sps:$4 sm:$0xff]  }
  0x4c   :  { %1078 = vmatpush1.bf16.msra.mxu1 %v1574_v45  ;;  %1038 = vmatprep.subr.bf16.mxu0 %v1579_v46  ;;  %v1646_v45 = vld [vmem:[#allocation8 + $0x2c8] ss:$16 sps:$4 sm:$0xff]   ;;  %v1651_v46 = vld [vmem:[#allocation8 + $0xac] ss:$16 sps:$4 sm:$0xff]  }
  0x4d   :  { %1079 = vmatprep.subr.bf16.mxu1 %v1582_v47  ;;  %v1654_v47 = vld [vmem:[#allocation8 + $0x2ac] ss:$16 sps:$4 sm:$0xff]  }
  0x4f   :  { %1039 = vmatpush1.bf16.msra.mxu0 %v1577_v48  ;;  %v1649_v48 = vld [vmem:[#allocation8 + $0xa8] ss:$16 sps:$4 sm:$0xff]  }
  0x50   :  { %1080 = vmatpush1.bf16.msra.mxu1 %v1580_v49  ;;  %1040 = vmatprep.subr.bf16.mxu0 %v1585_v50  ;;  %v1652_v49 = vld [vmem:[#allocation8 + $0x2a8] ss:$16 sps:$4 sm:$0xff]   ;;  %v1657_v50 = vld [vmem:[#allocation8 + $0x8c] ss:$16 sps:$4 sm:$0xff]  }
  0x51   :  { %1081 = vmatprep.subr.bf16.mxu1 %v1588_v51  ;;  %v1660_v51 = vld [vmem:[#allocation8 + $0x28c] ss:$16 sps:$4 sm:$0xff]  }
  0x53   :  { %1041 = vmatpush1.bf16.msra.mxu0 %v1583_v52  ;;  %v1655_v52 = vld [vmem:[#allocation8 + $0x88] ss:$16 sps:$4 sm:$0xff]  }
  0x54   :  { %1082 = vmatpush1.bf16.msra.mxu1 %v1586_v53  ;;  %1042 = vmatprep.subr.bf16.mxu0 %v1591_v54  ;;  %v1658_v53 = vld [vmem:[#allocation8 + $0x288] ss:$16 sps:$4 sm:$0xff]   ;;  %v1663_v54 = vld [vmem:[#allocation8 + $0x6c] ss:$16 sps:$4 sm:$0xff]  }
  0x55   :  { %1083 = vmatprep.subr.bf16.mxu1 %v1594_v55  ;;  %v1666_v55 = vld [vmem:[#allocation8 + $0x26c] ss:$16 sps:$4 sm:$0xff]  }
  0x57   :  { %1043 = vmatpush2.bf16.msra.mxu0 %v1589_v56  ;;  %v1661_v56 = vld [vmem:[#allocation8 + $0x68] ss:$16 sps:$4 sm:$0xff]  }
  0x58   :  { %1084 = vmatpush2.bf16.msra.mxu1 %v1592_v57  ;;  %1044 = vmatprep.subr.bf16.mxu0 %v1597_v58  ;;  %v1664_v57 = vld [vmem:[#allocation8 + $0x268] ss:$16 sps:$4 sm:$0xff]   ;;  %v1669_v58 = vld [vmem:[#allocation8 + $0x4c] ss:$16 sps:$4 sm:$0xff]  }
  0x59   :  { %1085 = vmatprep.subr.bf16.mxu1 %v1600_v59  ;;  %v1672_v59 = vld [vmem:[#allocation8 + $0x24c] ss:$16 sps:$4 sm:$0xff]  }
  0x5b   :  { %1045 = vmatpush2.bf16.msra.mxu0 %v1595_v60  ;;  %v1667_v60 = vld [vmem:[#allocation8 + $0x48] ss:$16 sps:$4 sm:$0xff]  }
  0x5c   :  { %1086 = vmatpush2.bf16.msra.mxu1 %v1598_v61  ;;  %1046 = vmatprep.subr.bf16.mxu0 %v1603_v62  ;;  %v1670_v61 = vld [vmem:[#allocation8 + $0x248] ss:$16 sps:$4 sm:$0xff]   ;;  %v1675_v62 = vld [vmem:[#allocation8 + $0x2c] ss:$16 sps:$4 sm:$0xff]  }
  0x5d   :  { %1087 = vmatprep.subr.bf16.mxu1 %v1606_v63  ;;  %v1678_v63 = vld [vmem:[#allocation8 + $0x22c] ss:$16 sps:$4 sm:$0xff]  }
  0x5f   :  { %1047 = vmatpush2.bf16.msra.mxu0 %v1601_v0  ;;  %v1673_v0 = vld [vmem:[#allocation8 + $0x28] ss:$16 sps:$4 sm:$0xff]  }
  0x60   :  { %1088 = vmatpush2.bf16.msra.mxu1 %v1604_v1  ;;  %1048 = vmatprep.subr.bf16.mxu0 %v1609_v2  ;;  %v1676_v1 = vld [vmem:[#allocation8 + $0x228] ss:$16 sps:$4 sm:$0xff]   ;;  %v1681_v2 = vld [vmem:[#allocation8 + $0xc] ss:$16 sps:$4 sm:$0xff]  }
  0x61   :  { %1089 = vmatprep.subr.bf16.mxu1 %v1612_v3  ;;  %v1684_v3 = vld [vmem:[#allocation8 + $0x20c] ss:$16 sps:$4 sm:$0xff]  }
  0x63   :  { %1049 = vmatpush2.bf16.msra.mxu0 %v1607_v4  ;;  %v1679_v4 = vld [vmem:[#allocation8 + $0x8] ss:$16 sps:$4 sm:$0xff]  }
  0x64   :  { %1090 = vmatpush2.bf16.msra.mxu1 %v1610_v5  ;;  %1050 = vmatprep.subr.bf16.mxu0 %v1615_v6  ;;  %v1682_v5 = vld [vmem:[#allocation8 + $0x208] ss:$16 sps:$4 sm:$0xff]   ;;  %v1687_v6 = vld [vmem:[#allocation8 + $0x1ec] ss:$16 sps:$4 sm:$0xff]  }
  0x65   :  { %1091 = vmatprep.subr.bf16.mxu1 %v1618_v7  ;;  %v1690_v7 = vld [vmem:[#allocation8 + $0x3ec] ss:$16 sps:$4 sm:$0xff]  }
  0x67   :  { %1051 = vmatpush2.bf16.msra.mxu0 %v1613_v8  ;;  %v1685_v8 = vld [vmem:[#allocation8 + $0x1e8] ss:$16 sps:$4 sm:$0xff]  }
  0x68   :  { %1092 = vmatpush2.bf16.msra.mxu1 %v1616_v9  ;;  %1052 = vmatprep.subr.bf16.mxu0 %v1621_v10  ;;  %v1688_v9 = vld [vmem:[#allocation8 + $0x3e8] ss:$16 sps:$4 sm:$0xff]   ;;  %v1693_v10 = vld [vmem:[#allocation8 + $0x1cc] ss:$16 sps:$4 sm:$0xff]  }
  0x69   :  { %1093 = vmatprep.subr.bf16.mxu1 %v1624_v11  ;;  %v1696_v11 = vld [vmem:[#allocation8 + $0x3cc] ss:$16 sps:$4 sm:$0xff]  }
  0x6b   :  { %1053 = vmatpush2.bf16.msra.mxu0 %v1619_v12  ;;  %v1691_v12 = vld [vmem:[#allocation8 + $0x1c8] ss:$16 sps:$4 sm:$0xff]  }
  0x6c   :  { %1094 = vmatpush2.bf16.msra.mxu1 %v1622_v13  ;;  %1054 = vmatprep.subr.bf16.mxu0 %v1627_v14  ;;  %v1694_v13 = vld [vmem:[#allocation8 + $0x3c8] ss:$16 sps:$4 sm:$0xff]   ;;  %v1699_v14 = vld [vmem:[#allocation8 + $0x1ac] ss:$16 sps:$4 sm:$0xff]  }
  0x6d   :  { %1095 = vmatprep.subr.bf16.mxu1 %v1630_v15  ;;  %v1702_v15 = vld [vmem:[#allocation8 + $0x3ac] ss:$16 sps:$4 sm:$0xff]  }
  0x6f   :  { %1055 = vmatpush2.bf16.msra.mxu0 %v1625_v16  ;;  %v1697_v16 = vld [vmem:[#allocation8 + $0x1a8] ss:$16 sps:$4 sm:$0xff]  }
  0x70   :  { %1096 = vmatpush2.bf16.msra.mxu1 %v1628_v17  ;;  %1056 = vmatprep.subr.bf16.mxu0 %v1633_v18  ;;  %v1700_v17 = vld [vmem:[#allocation8 + $0x3a8] ss:$16 sps:$4 sm:$0xff]   ;;  %v1705_v18 = vld [vmem:[#allocation8 + $0x18c] ss:$16 sps:$4 sm:$0xff]  }
  0x71   :  { %1097 = vmatprep.subr.bf16.mxu1 %v1636_v19  ;;  %v1708_v19 = vld [vmem:[#allocation8 + $0x38c] ss:$16 sps:$4 sm:$0xff]  }
  0x73   :  { %1057 = vmatpush2.bf16.msra.mxu0 %v1631_v20  ;;  %v1703_v20 = vld [vmem:[#allocation8 + $0x188] ss:$16 sps:$4 sm:$0xff]  }
  0x74   :  { %1098 = vmatpush2.bf16.msra.mxu1 %v1634_v21  ;;  %1108 = vmatprep.subr.bf16.mxu0 %v1639_v22  ;;  %v1706_v21 = vld [vmem:[#allocation8 + $0x388] ss:$16 sps:$4 sm:$0xff]   ;;  %v1711_v22 = vld [vmem:[#allocation8 + $0x16c] ss:$16 sps:$4 sm:$0xff]  }
  0x75   :  { %1149 = vmatprep.subr.bf16.mxu1 %v1642_v23  ;;  %v1714_v23 = vld [vmem:[#allocation8 + $0x36c] ss:$16 sps:$4 sm:$0xff]  }
  0xf6   :  { %v180_v24 = vpop.f32.mrf.mxu0 }
  0xf7   :  { %v221_v25 = vpop.f32.mrf.mxu1  ;;  %v228_v27 = vmax.f32 %v180_v24, 0.0  ;;  %v1709_v24 = vld [vmem:[#allocation8 + $0x168] ss:$16 sps:$4 sm:$0xff]  }
  0xf8   :  { %v230_v26 = vmax.f32 %v221_v25, 0.0  ;;  %v182_v28 = vpop.f32.mrf.mxu0  ;;  %v1712_v25 = vld [vmem:[#allocation8 + $0x368] ss:$16 sps:$4 sm:$0xff]  }
  0xf9   :  { %v223_v29 = vpop.f32.mrf.mxu1  ;;  %v229_v30 = vmax.f32 %v182_v28, 0.0  ;;  %v1872_v39 = vpack.c.bf16 %v228_v27, %v228_v27  ;;  %v1720_v27 = vld [vmem:[#allocation8 + $0x34c] ss:$16 sps:$4 sm:$0xff]   ;;  %v1715_v28 = vld [vmem:[#allocation8 + $0x148] ss:$16 sps:$4 sm:$0xff]  }
  0xfa   :  { %v231_v31 = vmax.f32 %v223_v29, 0.0  ;;  %v1870_v32 = vpack.c.bf16 %v230_v26, %v230_v26  ;;  %v184_v33 = vpop.f32.mrf.mxu0  ;;  %v1717_v26 = vld [vmem:[#allocation8 + $0x14c] ss:$16 sps:$4 sm:$0xff]   ;;  %v1718_v29 = vld [vmem:[#allocation8 + $0x348] ss:$16 sps:$4 sm:$0xff]  }
  0xfb   :  { %v225_v34 = vpop.f32.mrf.mxu1  ;;  %v233_v35 = vpack.c.bf16 %v229_v30, %v229_v30  ;;  %v1723_v30 = vld [vmem:[#allocation8 + $0x12c] ss:$16 sps:$4 sm:$0xff]   ;;  %v1721_v33 = vld [vmem:[#allocation8 + $0x128] ss:$16 sps:$4 sm:$0xff]  }
  0xfc   :  { %v235_v36 = vpack.c.bf16 %v231_v31, %v231_v31  ;;  %v185_v40 = vpop.f32.mrf.mxu0  ;;  %v1726_v31 = vld [vmem:[#allocation8 + $0x32c] ss:$16 sps:$4 sm:$0xff]   ;;  %v1724_v34 = vld [vmem:[#allocation8 + $0x328] ss:$16 sps:$4 sm:$0xff]  }
  0xfd   :  { %v226_v41 = vpop.f32.mrf.mxu1  ;;  %1058 = vmatprep.mubr.bf16.mxu0 %v233_v35  ;;  %v366_v40 = vlaneseq }
  0xfe   :  { %1099 = vmatprep.mubr.bf16.mxu1 %v235_v36  ;;  %1059 = vmatmul.mubr.bf16.vlgmr.msra.gmra.mxu0 %v1872_v39 }
  0xff   :  { %1100 = vmatmul.mubr.bf16.vlgmr.msra.gmra.mxu1 %v1870_v32  ;;  %1109 = vmatpush1.bf16.msra.mxu0 %v1637_v37  ;;  %v1727_v37 = vld [vmem:[#allocation8 + $0x108] ss:$16 sps:$4 sm:$0xff]   ;;  %v367_v41 = vshrl.u32 %v366_v40, 7 }
 0x100   :  { %1150 = vmatpush1.bf16.msra.mxu1 %v1640_v38  ;;  %1140 = vmatprep.mubr.bf16.mxu0 %v233_v35  ;;  %v1729_v35 = vld [vmem:[#allocation8 + $0x10c] ss:$16 sps:$4 sm:$0xff]   ;;  %v1730_v38 = vld [vmem:[#allocation8 + $0x308] ss:$16 sps:$4 sm:$0xff]  }
 0x101   :  { %1181 = vmatprep.mubr.bf16.mxu1 %v235_v36  ;;  %1110 = vmatprep.subr.bf16.mxu0 %v1645_v42  ;;  %v1732_v36 = vld [vmem:[#allocation8 + $0x30c] ss:$16 sps:$4 sm:$0xff]   ;;  %v1194_v42 = vld [vmem:[%s1894_s4] sm:$0xf] }
 0x102   :  { %1151 = vmatprep.subr.bf16.mxu1 %v1648_v43  ;;  %v372_v43 = vsub.s32 1, %v367_v41 }
 0x103   :  { %1111 = vmatpush1.bf16.msra.mxu0 %v1643_v44 }
 0x104   :  { %1152 = vmatpush1.bf16.msra.mxu1 %v1646_v45  ;;  %1112 = vmatprep.subr.bf16.mxu0 %v1651_v46  ;;  %v1205_v44 = vrot.slane %v1194_v42, %v372_v43  ;;  %v380_v45 = vsub.s32 3, %v367_v41 }
 0x105   :  { %1153 = vmatprep.subr.bf16.mxu1 %v1654_v47  ;;  %v368_v47 = vsub.s32 0, %v367_v41 }
 0x106   :  { %v1213_v46 = vrot.slane %v1194_v42, %v380_v45 }
 0x107   :  { %1113 = vmatpush1.bf16.msra.mxu0 %v1649_v48  ;;  %v364_v48 = vld [vmem:[%s1893_s3] sm:$0xf] }
 0x108   :  { %1154 = vmatpush1.bf16.msra.mxu1 %v1652_v49  ;;  %1114 = vmatprep.subr.bf16.mxu0 %v1657_v50  ;;  %v373_v49 = vrot.slane %v364_v48, %v372_v43 }
 0x109   :  { %1155 = vmatprep.subr.bf16.mxu1 %v1660_v51 }
 0x10b   :  { %1115 = vmatpush1.bf16.msra.mxu0 %v1655_v52 }
 0x10c   :  { %1156 = vmatpush1.bf16.msra.mxu1 %v1658_v53  ;;  %1116 = vmatprep.subr.bf16.mxu0 %v1663_v54 }
 0x10d   :  { %1157 = vmatprep.subr.bf16.mxu1 %v1666_v55 }
 0x10f   :  { %1117 = vmatpush1.bf16.msra.mxu0 %v1661_v56 }
 0x110   :  { %1158 = vmatpush1.bf16.msra.mxu1 %v1664_v57  ;;  %1118 = vmatprep.subr.bf16.mxu0 %v1669_v58 }
 0x111   :  { %1159 = vmatprep.subr.bf16.mxu1 %v1672_v59 }
 0x113   :  { %1119 = vmatpush1.bf16.msra.mxu0 %v1667_v60 }
 0x114   :  { %1160 = vmatpush1.bf16.msra.mxu1 %v1670_v61  ;;  %1120 = vmatprep.subr.bf16.mxu0 %v1675_v62 }
 0x115   :  { %1161 = vmatprep.subr.bf16.mxu1 %v1678_v63  ;;  %v1201_v63 = vrot.slane %v1194_v42, %v368_v47 }
 0x117   :  { %1121 = vmatpush1.bf16.msra.mxu0 %v1673_v0  ;;  %v376_v0 = vsub.s32 2, %v367_v41 }
 0x118   :  { %1162 = vmatpush1.bf16.msra.mxu1 %v1676_v1  ;;  %1122 = vmatprep.subr.bf16.mxu0 %v1681_v2  ;;  %v381_v2 = vrot.slane %v364_v48, %v380_v45 }
 0x119   :  { %1163 = vmatprep.subr.bf16.mxu1 %v1684_v3  ;;  %v377_v1 = vrot.slane %v364_v48, %v376_v0 }
 0x11b   :  { %1123 = vmatpush1.bf16.msra.mxu0 %v1679_v4 }
 0x11c   :  { %1164 = vmatpush1.bf16.msra.mxu1 %v1682_v5  ;;  %1124 = vmatprep.subr.bf16.mxu0 %v1687_v6 }
 0x11d   :  { %1165 = vmatprep.subr.bf16.mxu1 %v1690_v7 }
 0x11f   :  { %1125 = vmatpush2.bf16.msra.mxu0 %v1685_v8 }
 0x120   :  { %1166 = vmatpush2.bf16.msra.mxu1 %v1688_v9  ;;  %1126 = vmatprep.subr.bf16.mxu0 %v1693_v10 }
 0x121   :  { %1167 = vmatprep.subr.bf16.mxu1 %v1696_v11 }
 0x123   :  { %1127 = vmatpush2.bf16.msra.mxu0 %v1691_v12 }
 0x124   :  { %1168 = vmatpush2.bf16.msra.mxu1 %v1694_v13  ;;  %1128 = vmatprep.subr.bf16.mxu0 %v1699_v14 }
 0x125   :  { %1169 = vmatprep.subr.bf16.mxu1 %v1702_v15 }
 0x127   :  { %1129 = vmatpush2.bf16.msra.mxu0 %v1697_v16 }
 0x128   :  { %1170 = vmatpush2.bf16.msra.mxu1 %v1700_v17  ;;  %1130 = vmatprep.subr.bf16.mxu0 %v1705_v18  ;;  %v1209_v17 = vrot.slane %v1194_v42, %v376_v0 }
 0x129   :  { %1171 = vmatprep.subr.bf16.mxu1 %v1708_v19 }
 0x12b   :  { %1131 = vmatpush2.bf16.msra.mxu0 %v1703_v20  ;;  %v1196_v20 = vstv %s1895_s5 }
 0x12c   :  { %1172 = vmatpush2.bf16.msra.mxu1 %v1706_v21  ;;  %1132 = vmatprep.subr.bf16.mxu0 %v1711_v22 }
 0x12d   :  { %1173 = vmatprep.subr.bf16.mxu1 %v1714_v23 }
 0x12f   :  { %1133 = vmatpush2.bf16.msra.mxu0 %v1709_v24 }
 0x130   :  { %1174 = vmatpush2.bf16.msra.mxu1 %v1712_v25  ;;  %1134 = vmatprep.subr.bf16.mxu0 %v1717_v26 }
 0x131   :  { %1175 = vmatprep.subr.bf16.mxu1 %v1720_v27 }
 0x133   :  { %1135 = vmatpush2.bf16.msra.mxu0 %v1715_v28 }
 0x134   :  { %1176 = vmatpush2.bf16.msra.mxu1 %v1718_v29  ;;  %1136 = vmatprep.subr.bf16.mxu0 %v1723_v30 }
 0x135   :  { %1177 = vmatprep.subr.bf16.mxu1 %v1726_v31 }
 0x137   :  { %1137 = vmatpush2.bf16.msra.mxu0 %v1721_v33 }
 0x138   :  { %1178 = vmatpush2.bf16.msra.mxu1 %v1724_v34  ;;  %1138 = vmatprep.subr.bf16.mxu0 %v1729_v35 }
 0x139   :  { %1179 = vmatprep.subr.bf16.mxu1 %v1732_v36 }
 0x13b   :  { %1139 = vmatpush2.bf16.msra.mxu0 %v1727_v37 }
 0x13c   :  { %1180 = vmatpush2.bf16.msra.mxu1 %v1730_v38 }
 0x13e   :  { %1141 = vmatmul.mubr.bf16.vlgmr.msra.gmra.mxu0 %v1872_v39  ;;  %v369_v39 = vrot.slane %v364_v48, %v368_v47 }
 0x13f   :  { %1182 = vmatmul.mubr.bf16.vlgmr.msra.gmra.mxu1 %v1870_v32  ;;  %1282 = vmatprep.mubr.f32.mxu0 %v1205_v44 }
 0x140   :  { %1352 = vmatprep.mubr.f32.mxu1 %v1213_v46 }
 0x1be   :  { %v1060_v32 = vpop.f32.mrf.mxu0 }
 0x1bf   :  { %v1101_v50 = vpop.f32.mrf.mxu1  ;;  %v1061_v51 = vadd.f32 %v1060_v32, %v369_v39 }
 0x1c0   :  { %v1062_v52 = vpop.f32.mrf.mxu0 }
 0x1c1   :  { %v1103_v53 = vpop.f32.mrf.mxu1  ;;  %v1063_v54 = vadd.f32 %v1062_v52, %v373_v49  ;;  %v1102_v55 = vadd.f32 %v1101_v50, %v1061_v51 }
 0x1c2   :  { %v1064_v56 = vpop.f32.mrf.mxu0 }
 0x1c3   :  { %v1105_v57 = vpop.f32.mrf.mxu1  ;;  %v1104_v58 = vadd.f32 %v1103_v53, %v1063_v54  ;;  %v1190_v62 = vmax.f32 %v1102_v55, 0.0 }
 0x1c4   :  { %v1065_v59 = vpop.f32.mrf.mxu0 }
 0x1c5   :  { %v1106_v60 = vpop.f32.mrf.mxu1  ;;  %v1191_v61 = vmax.f32 %v1104_v58, 0.0 }
 0x1c7   :  { %1248 = vmatprep.subr.mxu0 %v1191_v61 }
 0x1c8   :  { %1249 = vmatpush1.xpose.msra.mxu0 %v1190_v62 }
 0x1cb   :  { %1283 = vmatmul.mubr.f32.vlgmr.msra.gmra.mxu0 %v1201_v63 }
 0x1fe   :  { %v1142_v3 = vpop.f32.mrf.mxu0 }
 0x1ff   :  { %v1183_v4 = vpop.f32.mrf.mxu1  ;;  %v1143_v5 = vadd.f32 %v1142_v3, %v377_v1 }
 0x200   :  { %v1144_v6 = vpop.f32.mrf.mxu0 }
 0x201   :  { %v1185_v7 = vpop.f32.mrf.mxu1  ;;  %v1145_v8 = vadd.f32 %v1144_v6, %v381_v2  ;;  %v1184_v9 = vadd.f32 %v1183_v4, %v1143_v5 }
 0x202   :  { %v1146_v10 = vpop.f32.mrf.mxu0 }
 0x203   :  { %v1187_v11 = vpop.f32.mrf.mxu1  ;;  %v1186_v12 = vadd.f32 %v1185_v7, %v1145_v8  ;;  %v1192_v16 = vmax.f32 %v1184_v9, 0.0 }
 0x204   :  { %v1147_v13 = vpop.f32.mrf.mxu0 }
 0x205   :  { %v1188_v14 = vpop.f32.mrf.mxu1  ;;  %v1193_v15 = vmax.f32 %v1186_v12, 0.0 }
 0x207   :  { %1318 = vmatprep.subr.mxu1 %v1193_v15 }
 0x208   :  { %1319 = vmatpush1.xpose.msra.mxu1 %v1192_v16 }
 0x20b   :  { %1353 = vmatmul.mubr.f32.vlgmr.msra.gmra.mxu1 %v1209_v17 }
 0x28b   :  { %v1284_v18 = vpop.f32.mrf.mxu0 }
 0x28c   :  { %v1285_v21 = vadd.f32 %v1284_v18, %v1196_v20 }
 0x28d   :  { %v1286_v19 = vpop.f32.mrf.mxu0 }
 0x2cb   :  { %v1354_v22 = vpop.f32.mrf.mxu1 }
 0x2cc   :  { %v1355_v23 = vadd.f32 %v1354_v22, %v1285_v21 }
 0x2cd   :  { %v1356_v24 = vpop.f32.mrf.mxu1 }
 0x2ce   :  { %1359 = vst.msk [vmem:[#allocation9] sm:$0x1] %vm1358_vm2, %v1355_v23 }
 0x2cf   :  { %1804 = shalt.err (!%p1801_p5)
}
 0x2d0   :  { %1369 = dma.vmem_to_hbm [thread:$0]  %s1367_s16, 16, %s1896_s6, [#allocation5]  }
 0x2d1   :  { %1817 = dma.done.wait [#allocation5], 16  }
 0x2d2   :  { %1818 = vsyncadd [#allocation5], 4294967280 }
 0x2d3   :  { %1373 = vsyncpa [#allocation4], 1 }
 0x2d4   :  { %1374 = vsyncpa [#allocation7], 1 }
 0x2d5   :  { %1375 = vsyncpa [#allocation5], 1 }

</bundles_post_ra>
